<compile_context>
chip_gen: v7x
topology: tpu7x:2x2x1
jax: 0.10.0
libtpu: 0.0.40
codegen_flags: <defaults>
</compile_context>

<pallas_src>
import functools

import numpy as np
import jax
import jax.numpy as jnp
from jax import lax
from jax.experimental import pallas as pl
from jax.experimental.pallas import tpu as pltpu


def _round_up(x, m):
    return ((x + m - 1) // m) * m


def _cdiv(a, b):
    return (a + b - 1) // b


def _length_regulator_kernel(koff_ref, totals_ref, *refs,
                             pad_value, tile_t, num_windows):
    """One (batch, frame-tile) grid step: out tile = sum_w M_w @ xs_window_w."""
    del koff_ref  # consumed only by the index_maps
    out_ref = refs[-1]
    se_refs = refs[:num_windows]
    xs_refs = refs[num_windows:2 * num_windows]

    b = pl.program_id(0)
    t0 = pl.program_id(1) * tile_t
    g = se_refs[0].shape[-1]

    # Loop-invariant frame iota; t0 is folded into the (1, g) start/end rows.
    frame = lax.broadcasted_iota(jnp.int32, (tile_t, g), 0)

    acc = None
    for w in range(num_windows):
        se = se_refs[w][0]                       # (2, g) int32: [start; end)
        start = se[0:1, :] - t0                  # (1, g)
        end = se[1:2, :] - t0                    # (1, g)
        mask = jnp.logical_and(frame >= start, frame < end)   # (tile_t, g)
        xs_w = xs_refs[w][0]                     # (g, d_pad)
        sel = mask.astype(xs_w.dtype)            # single cast; bf16 stays bf16
        part = jnp.dot(sel, xs_w, preferred_element_type=jnp.float32)
        acc = part if acc is None else acc + part

    res = acc.astype(out_ref.dtype)              # (tile_t, d_pad)

    if pad_value == 0.0:
        # All-zero selection rows already produce 0 == pad_value.
        out_ref[0] = res
    else:
        total = totals_ref[b]

        @pl.when(t0 + tile_t <= total)           # interior tiles: no select at all
        def _():
            out_ref[0] = res

        @pl.when(t0 + tile_t > total)            # boundary tiles only
        def _():
            valid = t0 + lax.broadcasted_iota(jnp.int32, (tile_t, 1), 0) < total
            out_ref[0] = jnp.where(valid, res,
                                   jnp.array(pad_value, dtype=out_ref.dtype))


def length_regulator(xs, ds, alpha=1.0, pad_value=0.0, max_tile_t=None):
    """Pallas LengthRegulator forward (training path, is_inference=False).

    Args:
        xs: (B, Tmax, D) float array of phoneme embeddings.
        ds: (B, Tmax) integer durations.  Must be concrete (host-side cumsum);
            this function cannot be called with a traced `ds` under jax.jit.
    Returns:
        (B, T_out, D) array, T_out = max_b sum(ds[b]), padded with pad_value.
    """
    xs = jnp.asarray(xs)
    ds_np = np.asarray(ds).astype(np.int64)

    # --- duration preprocessing (matches the PyTorch module) ---
    if alpha != 1.0:
        assert alpha > 0
        ds_np = np.round(ds_np.astype(np.float64) * alpha).astype(np.int64)
    if ds_np.sum() == 0:
        ds_np = np.where(ds_np.sum(axis=1, keepdims=True) == 0, 1, ds_np)

    B, Tmax, D = xs.shape
    itemsize = jnp.dtype(xs.dtype).itemsize

    # --- host-side cumsum: [start, end) frame windows per phoneme, totals per batch ---
    end_np = np.cumsum(ds_np, axis=1).astype(np.int32)        # (B, Tmax)
    start_np = (end_np - ds_np).astype(np.int32)
    totals_np = end_np[:, -1].astype(np.int32)                # (B,)
    t_out = int(totals_np.max())

    # --- frame-tile size: sublane multiple of the output dtype, VMEM-aware cap ---
    sub_mult = max(8, 32 // itemsize)            # 8 (f32), 16 (bf16), 32 (int8)
    if max_tile_t is None:
        max_tile_t = 256
        try:  # larger tiles on 128 MiB-VMEM parts (v5e/v6e); keep 256 on v7x
            info = pltpu.get_tpu_info()
            if getattr(info, "vmem_capacity_bytes", 0) >= 96 * 1024 * 1024:
                max_tile_t = 512
        except Exception:
            pass
    max_tile_t = _round_up(max_tile_t, sub_mult)
    if t_out <= max_tile_t:
        tile_t = max(sub_mult, _round_up(t_out, sub_mult))
    else:
        tile_t = max_tile_t
    if B == 1 and t_out > sub_mult:
        # v7x shards parallel grid axes over 2 TensorCores: guarantee >= 2 tiles.
        half = max(sub_mult, _round_up(_cdiv(t_out, 2), sub_mult))
        tile_t = min(tile_t, half)
    n_tiles = _cdiv(t_out, tile_t)

    # --- windowed contraction: which phonemes intersect each frame tile ---
    tile_starts = np.arange(n_tiles, dtype=np.int64) * tile_t
    tile_ends = np.minimum(tile_starts + tile_t, t_out)
    i0_all = np.empty((B, n_tiles), np.int64)
    i1_all = np.empty((B, n_tiles), np.int64)
    for b in range(B):
        i0_all[b] = np.searchsorted(end_np[b], tile_starts, side="right")
        i1_all[b] = np.searchsorted(start_np[b], tile_ends, side="left") - 1
    spans = np.maximum(i1_all - i0_all + 1, 0)
    max_span = int(spans.max()) if spans.size else 1

    k_align = 128                                # safe MXU alignment on all chips
    G = _round_up(max(max_span, 1), k_align)     # phoneme window block size
    tmax_pad = _round_up(Tmax, G)
    n_kblocks = tmax_pad // G
    num_windows = 1 if n_kblocks == 1 else 2     # 2 consecutive G-blocks cover any span<=G

    koff_np = np.zeros((B, n_tiles, num_windows), np.int32)
    if num_windows == 2:
        k0 = np.minimum(i0_all // G, n_kblocks - 2)
        k0 = np.where(spans > 0, k0, 0)
        k0 = np.clip(k0, 0, n_kblocks - 2)
        koff_np[:, :, 0] = k0
        koff_np[:, :, 1] = k0 + 1
        nz = spans > 0
        assert np.all(~nz | (i0_all >= koff_np[:, :, 0].astype(np.int64) * G))
        assert np.all(~nz | (i1_all < (koff_np[:, :, 0].astype(np.int64) + 2) * G))
    koff_flat = koff_np.reshape(-1)              # 1-D SMEM table (avoids 2-D padding)

    # --- packed (start, end) and padded xs ---
    d_pad = _round_up(D, 128)
    se_pad = np.zeros((B, 2, tmax_pad), np.int32)    # padded phonemes: start==end==0
    se_pad[:, 0, :Tmax] = start_np
    se_pad[:, 1, :Tmax] = end_np

    xs_pad = xs
    if tmax_pad != Tmax or d_pad != D:
        xs_pad = jnp.pad(xs, ((0, 0), (0, tmax_pad - Tmax), (0, d_pad - D)))

    # --- VMEM budget (sublane-padded footprints), capped well below v7x's 64 MiB ---
    est_vmem = (2 * tile_t * d_pad * itemsize                # out double buffer
                + num_windows * 2 * G * d_pad * itemsize     # xs window double buffers
                + num_windows * 2 * 8 * G * 4                # se blocks (pad to 8 sublanes)
                + num_windows * tile_t * G * (4 + itemsize)  # mask + sel scratch
                + 2 * tile_t * d_pad * 4)                    # f32 matmul result + acc
    vmem_limit = int(min(max(int(est_vmem * 1.5), 16 * 1024 * 1024), 40 * 1024 * 1024))

    # --- BlockSpecs (index maps receive the scalar-prefetch refs positionally) ---
    se_specs = [
        pl.BlockSpec(
            (1, 2, G),
            (lambda b, t, koff, totals, w=w:
             (b, 0, koff[(b * n_tiles + t) * num_windows + w])))
        for w in range(num_windows)
    ]
    xs_specs = [
        pl.BlockSpec(
            (1, G, d_pad),
            (lambda b, t, koff, totals, w=w:
             (b, koff[(b * n_tiles + t) * num_windows + w], 0)))
        for w in range(num_windows)
    ]
    out_spec = pl.BlockSpec((1, tile_t, d_pad),
                            lambda b, t, koff, totals: (b, t, 0))

    kernel = functools.partial(_length_regulator_kernel,
                               pad_value=float(pad_value), tile_t=tile_t,
                               num_windows=num_windows)

    out = pl.pallas_call(
        kernel,
        # Frame axis is exact: Pallas masks the partial last block, no post-slice copy.
        out_shape=jax.ShapeDtypeStruct((B, t_out, d_pad), xs.dtype),
        grid_spec=pltpu.PrefetchScalarGridSpec(
            num_scalar_prefetch=2,                # koff table + totals -> SMEM
            grid=(B, n_tiles),
            in_specs=se_specs + xs_specs,
            out_specs=out_spec,
        ),
        compiler_params=pltpu.CompilerParams(
            dimension_semantics=("parallel", "parallel"),
            vmem_limit_bytes=vmem_limit),
    )(jnp.asarray(koff_flat), jnp.asarray(totals_np),
      *([jnp.asarray(se_pad)] * num_windows),
      *([xs_pad] * num_windows))

    if d_pad != D:                                # only slice when lanes were padded
        out = out[:, :, :D]
    return out


def _reference_length_regulator(xs, ds, pad_value=0.0):
    """NumPy reference mirroring the PyTorch repeat_interleave + pad_list path."""
    xs = np.asarray(xs)
    ds = np.asarray(ds)
    reps = [np.repeat(x, d, axis=0) for x, d in zip(xs, ds)]
    maxlen = max(r.shape[0] for r in reps)
    out = np.full((xs.shape[0], maxlen, xs.shape[2]), pad_value, dtype=xs.dtype)
    for b, r in enumerate(reps):
        out[b, : r.shape[0]] = r
    return out


if __name__ == "__main__":
    key = jax.random.PRNGKey(0)
    kx, kd, kx2, kd2 = jax.random.split(key, 4)

    # --- small case, pad_value == 0 path (select skipped in-kernel) ---
    B, Tmax, D = 2, 8, 32
    xs = jax.random.normal(kx, (B, Tmax, D), dtype=jnp.float32)
    ds = jax.random.randint(kd, (B, Tmax), 0, 4, dtype=jnp.int32)
    out = jax.block_until_ready(length_regulator(xs, ds, alpha=1.0, pad_value=0.0))
    ref = _reference_length_regulator(np.asarray(xs), np.asarray(ds), pad_value=0.0)
    assert out.shape == ref.shape, (out.shape, ref.shape)
    np.testing.assert_allclose(np.asarray(out), ref, rtol=1e-5, atol=1e-5)

    # --- small case, non-zero pad_value (boundary-gated select path) ---
    out2 = jax.block_until_ready(length_regulator(xs, ds, alpha=1.0, pad_value=1.5))
    ref2 = _reference_length_regulator(np.asarray(xs), np.asarray(ds), pad_value=1.5)
    assert out2.shape == ref2.shape, (out2.shape, ref2.shape)
    np.testing.assert_allclose(np.asarray(out2), ref2, rtol=1e-5, atol=1e-5)

    # --- longer case exercising multiple frame tiles and the 2-window contraction ---
    B2, Tmax2, D2 = 2, 300, 64
    xs3 = jax.random.normal(kx2, (B2, Tmax2, D2), dtype=jnp.float32)
    ds3 = jax.random.randint(kd2, (B2, Tmax2), 0, 4, dtype=jnp.int32)
    out3 = jax.block_until_ready(
        length_regulator(xs3, ds3, alpha=1.0, pad_value=0.0, max_tile_t=128))
    ref3 = _reference_length_regulator(np.asarray(xs3), np.asarray(ds3), pad_value=0.0)
    assert out3.shape == ref3.shape, (out3.shape, ref3.shape)
    np.testing.assert_allclose(np.asarray(out3), ref3, rtol=1e-5, atol=1e-5)

    print("KERNEL_OK")
</pallas_src>

<mosaic_0001>
module attributes {stable_mosaic.version = 11 : i64} {
  func.func @_length_regulator_kernel(%arg0: i32, %arg1: i32, %arg2: memref<2xi32, #tpu.memory_space<smem>>, %arg3: memref<2xi32, #tpu.memory_space<smem>>, %arg4: memref<1x2x128xi32, #tpu.memory_space<vmem>>, %arg5: memref<1x128x128xf32, #tpu.memory_space<vmem>>, %arg6: memref<1x16x128xf32, #tpu.memory_space<vmem>>) attributes {dimension_semantics = [#tpu.dimension_semantics<parallel>, #tpu.dimension_semantics<parallel>], iteration_bounds = array<i64: 2, 1>, scalar_prefetch = 2 : i64, scratch_operands = 0 : i64, tpu.core_type = #tpu.core_type<tc>, window_params = [{transform_indices = @transform_0, window_bounds = array<i64: 1, 2, 128>}, {transform_indices = @transform_1, window_bounds = array<i64: 1, 128, 128>}, {transform_indices = @transform_2, window_bounds = array<i64: 1, 16, 128>}]} {
    %c16_i32 = arith.constant 16 : i32
    %0 = arith.muli %arg1, %c16_i32 : i32
    %1 = tpu.iota {dimensions = array<i32: 0>} : vector<16x128xi32>
    %c0 = arith.constant 0 : index
    %c0_0 = arith.constant 0 : index
    %c0_1 = arith.constant 0 : index
    %2 = vector.load %arg4[%c0, %c0_0, %c0_1] : memref<1x2x128xi32, #tpu.memory_space<vmem>>, vector<1x2x128xi32>
    %3 = vector.shape_cast %2 : vector<1x2x128xi32> to vector<2x128xi32>
    %4 = vector.extract_strided_slice %3 {offsets = [0, 0], sizes = [1, 128], strides = [1, 1]} : vector<2x128xi32> to vector<1x128xi32>
    %5 = vector.broadcast %0 : i32 to vector<1x128xi32>
    %6 = arith.subi %4, %5 : vector<1x128xi32>
    %7 = vector.extract_strided_slice %3 {offsets = [1, 0], sizes = [1, 128], strides = [1, 1]} : vector<2x128xi32> to vector<1x128xi32>
    %8 = vector.broadcast %0 : i32 to vector<1x128xi32>
    %9 = arith.subi %7, %8 : vector<1x128xi32>
    %10 = vector.broadcast %6 : vector<1x128xi32> to vector<16x128xi32>
    %11 = arith.cmpi sge, %1, %10 : vector<16x128xi32>
    %12 = vector.broadcast %9 : vector<1x128xi32> to vector<16x128xi32>
    %13 = arith.cmpi slt, %1, %12 : vector<16x128xi32>
    %14 = arith.andi %11, %13 : vector<16x128xi1>
    %c0_2 = arith.constant 0 : index
    %c0_3 = arith.constant 0 : index
    %c0_4 = arith.constant 0 : index
    %15 = vector.load %arg5[%c0_2, %c0_3, %c0_4] : memref<1x128x128xf32, #tpu.memory_space<vmem>>, vector<1x128x128xf32>
    %16 = vector.shape_cast %15 : vector<1x128x128xf32> to vector<128x128xf32>
    %17 = arith.extui %14 : vector<16x128xi1> to vector<16x128xi32>
    %18 = arith.sitofp %17 : vector<16x128xi32> to vector<16x128xf32>
    %cst = arith.constant dense<0.000000e+00> : vector<16x128xf32>
    %19 = tpu.matmul %18, %16, %cst {dimension_numbers = #tpu.dot_dimension_numbers<[1], [0], [0], [1], [0, 0, 1, 1], [], []>} : vector<16x128xf32>, vector<128x128xf32>, vector<16x128xf32> -> vector<16x128xf32>
    %c0_5 = arith.constant 0 : index
    %c0_6 = arith.constant 0 : index
    %c0_7 = arith.constant 0 : index
    %20 = vector.load %arg6[%c0_5, %c0_6, %c0_7] : memref<1x16x128xf32, #tpu.memory_space<vmem>>, vector<1x16x128xf32>
    %21 = vector.shape_cast %20 : vector<1x16x128xf32> to vector<16x128xf32>
    %22 = vector.shape_cast %19 : vector<16x128xf32> to vector<1x16x128xf32>
    tpu.vector_store %arg6[%c0_5, %c0_6, %c0_7], %22 {strides = array<i32>} : memref<1x16x128xf32, #tpu.memory_space<vmem>>, vector<1x16x128xf32>,
    return
  }
  func.func @transform_0(%arg0: i32, %arg1: i32, %arg2: memref<2xi32, #tpu.memory_space<smem>>, %arg3: memref<2xi32, #tpu.memory_space<smem>>) -> (i32, i32, i32) {
    %c1_i32 = arith.constant 1 : i32
    %0 = arith.muli %arg0, %c1_i32 : i32
    %1 = arith.addi %0, %arg1 : i32
    %c1_i32_0 = arith.constant 1 : i32
    %2 = arith.muli %1, %c1_i32_0 : i32
    %c0_i32 = arith.constant 0 : i32
    %3 = arith.addi %2, %c0_i32 : i32
    %4 = arith.index_cast %3 : i32 to index
    %5 = memref.load %arg2[%4] : memref<2xi32, #tpu.memory_space<smem>>
    %c0_i32_1 = arith.constant 0 : i32
    %c0_i32_2 = arith.constant 0 : i32
    return %arg0, %c0_i32_1, %5 : i32, i32, i32
  }
  func.func @transform_1(%arg0: i32, %arg1: i32, %arg2: memref<2xi32, #tpu.memory_space<smem>>, %arg3: memref<2xi32, #tpu.memory_space<smem>>) -> (i32, i32, i32) {
    %c1_i32 = arith.constant 1 : i32
    %0 = arith.muli %arg0, %c1_i32 : i32
    %1 = arith.addi %0, %arg1 : i32
    %c1_i32_0 = arith.constant 1 : i32
    %2 = arith.muli %1, %c1_i32_0 : i32
    %c0_i32 = arith.constant 0 : i32
    %3 = arith.addi %2, %c0_i32 : i32
    %4 = arith.index_cast %3 : i32 to index
    %5 = memref.load %arg2[%4] : memref<2xi32, #tpu.memory_space<smem>>
    %c0_i32_1 = arith.constant 0 : i32
    %c0_i32_2 = arith.constant 0 : i32
    return %arg0, %5, %c0_i32_1 : i32, i32, i32
  }
  func.func @transform_2(%arg0: i32, %arg1: i32, %arg2: memref<2xi32, #tpu.memory_space<smem>>, %arg3: memref<2xi32, #tpu.memory_space<smem>>) -> (i32, i32, i32) {
    %c0_i32 = arith.constant 0 : i32
    %c0_i32_0 = arith.constant 0 : i32
    return %arg0, %arg1, %c0_i32 : i32, i32, i32
  }
}

</mosaic_0001>

<bundles_post_ra>
// kernel: tpu_custom_call.1
= control target key start
LH: loop header
LB: loop body
LE: loop exit
PB: predicated region body
PF: predicated region fallthrough
CT: control target
= control target key end

     0   :  { %s954_s0 = inlined_call_operand.hbm [shape: s32[2], index: 0, kind: input, shape index: {}]   ;;  %s955_s2 = inlined_call_operand.vmem [shape: s32[2,2,128], index: 2, kind: input, shape index: {}]   ;;  %s956_s3 = inlined_call_operand.hbm [shape: f32[2,128,128], index: 3, kind: input, shape index: {}]   ;;  %s957_s4 = inlined_call_operand.vmem [shape: f32[2,15,128], index: 4, kind: output, shape index: {}]   ;;  %s958_s1 = inlined_call_operand.vmem [shape: s32[2], index: 1, kind: input, shape index: {}]  }
   0x1   :  { %s649_s17 = scalar_lea.hbm %s954_s0, 16 }
   0x2   :  { %p650_p0 = scmp.ne.s32.totalorder %s954_s0, %s649_s17  ;;  %p653_p1 = scmp.lt.u32.totalorder %s649_s17, %s954_s0 }
   0x4   :  { %p655_p2 = pnand %p653_p1, %p650_p0 }
   0x6   :  { %658 = shalt.err (!%p655_p2)  }
   0x7   :  { %s755_s22 = smov [#allocation3]   ;;  %s11_s27 = sshll.u32 %s958_s1, 4  ;;  %s12_s27 = int_to_ptr.vmem [resolvable:$true] %s11_s27 }
   0x8   :  { %10 = dma.hbm_to_smem %s954_s0, 16, %s755_s22, [#allocation2] }
   0x9   :  { %s659_s28 = scalar_lea.vmem %s12_s27, 16  ;;  %p664_p4 = scmp.lt.s32.totalorder %s12_s27, %s12_s27 }
   0xa   :  { %p660_p3 = scmp.ne.s32.totalorder %s12_s27, %s659_s28  ;;  %p665_p5 = scmp.lt.s32.totalorder %s659_s28, %s659_s28 }
   0xc   :  { %p666_p6 = por %p665_p5, %p664_p4 }
   0xe   :  { %p667_p7 = pnand %p666_p6, %p660_p3 }
  0x10   :  { %670 = shalt.err (!%p667_p7)  }
  0x11   :  { %s756_s29 = smov [#allocation4]  }
  0x12   :  { %14 = dma.vmem_to_smem %s12_s27, 16, %s756_s29, [#allocation2] }
  0x13   :  { %725 = dma.done.wait [#allocation2], 32 }
  0x14   :  { %726 = vsyncadd [#allocation2], 4294967264 }
  0x15   :  { %16 = sfence }
  0x16   :  { %17 = vsyncpa [#allocation6], 0 }
  0x17   :  { %19 = vsyncpa [#allocation6 + $0x1], 0  ;;  %s801_s0 = smov 0   ;;  %s803_s30 = smov 0  }
  0x18   :  { %s805_s1 = smov 0   ;;  %s807_s5 = smov 0  }
  0x19   :  { %s809_s6 = smov 0   ;;  %s811_s7 = smov 0  }
  0x1a LB: > { %s37_s8 = sadd.s32 1, %s749_s6  ;;  %s480_s9 = sadd.s32 4294967295, %s753_s7   ;;  %s753_s7 = sphi %s811_s7, %s25_s7   ;;  %s749_s6 = sphi %s809_s6, %s968_s6   ;;  %s745_s5 = sphi %s807_s5, %s967_s5   ;;  %s741_s1 = sphi %s805_s1, %s966_s1   ;;  %s737_s30 = sphi %s803_s30, %s965_s30   ;;  %s733_s0 = sphi %s801_s0, %s964_s0  }
  0x1b   : > { %p39_p8 = scmp.ge.s32.totalorder %s37_s8, 2  ;;  %s74_s10 = sld [smem:[#allocation3 + %s749_s6]] }
  0x1c   : > { %p95_p9 = scmp.ne.s32.totalorder %s737_s30, %s733_s0  ;;  %p89_p10 = scmp.ne.s32.totalorder %s741_s1, %s737_s30 }
  0x1d   : > { %s970_s8 = smov (%p39_p8, %s37_s8), 0  ;;  %p90_p11 = scmp.eq.s32.totalorder %s753_s7, 0 }
  0x1e   : > { %s76_s11 = sld [smem:[#allocation3 + %s970_s8]]  ;;  %p96_p12 = scmp.eq.s32.totalorder %s480_s9, 0 }
  0x1f   : > { %s77_s13 = ssub.s32 %s749_s6, %s970_s8  ;;  %s161_s14 = sand.u32 1, %s741_s1  }
  0x20   : > { %p839_p13 = por %p96_p12, %p95_p9  ;;  %s82_s15 = sadd.s32 1, %s741_s1 }
  0x21   : > { %p91_p0 = por %p90_p11, %p89_p10  ;;  %p595_p1 = scmp.lt.s32.totalorder %s753_s7, 2 }
  0x22   : > { %s960_s12 = scalar_select %p839_p13, 1, 0 }
  0x23   : > { %s484_s18 = sshll.u32 %s161_s14, 7  ;;  %p848_p3 = pnand %p595_p1, %p91_p0 }
  0x24   : > { %s78_s16 = ssub.s32 %s74_s10, %s76_s11  ;;  %p488_p4 = scmp.ge.s32.totalorder %s753_s7, 1 }
  0x25   : > { %s79_s17 = sor.u32 %s78_s16, %s77_s13  ;;  %p184_p5 = scmp.lt.s32.totalorder %s753_s7, 3 }
  0x26   : > { %p80_p2 = scmp.eq.s32.totalorder %s79_s17, 0  ;;  %s165_s24 = scalar_lea.vmem [#allocation5], %s484_s18 }
  0x27   : > { %s585_s20 = scalar_select %p91_p0, [#allocation3], [#allocation7] }
  0x28   : > { %s853_s21 = scalar_select %p80_p2, %s741_s1, %s82_s15  }
  0x29   : > { %s586_s22 = scalar_select %p91_p0, %s749_s6, 0 }
  0x2a   : > { %s972_s20 = smov (!%p595_p1, %s585_s20), [#allocation8]  ;;  %s176_s25 = sshll.u32 %s165_s24, 4  ;;  %s863_s25 = int_to_ptr.vmem [resolvable:$true] %s176_s25 }
  0x2b   : > { %s974_s22 = smov (!%p595_p1, %s586_s22), 0  ;;  %p858_p6 = pnand %p488_p4, %p184_p5 }
  0x2c   : > { %s167_s23 = sld [smem:[%s972_s20 + %s974_s22]]  ;;  %s486_s27 = sshll.u32 %s749_s6, 4 }
  0x2d   : > { %s870_s13 = scalar_lea.sflag [#allocation6], %s161_s14  ;;  %p673_p8 = pneg %p848_p3 }
  0x2e   : > { %s676_s18 = scalar_lea.hbm %s956_s3, 4096 }
  0x32   : > { %s485_s28 = sshll.u32 %s167_s23, 4 }
  0x33   : > { %s173_s29 = sadd.s32 %s486_s27, %s485_s28 }
  0x34   : > { %s487_s0 = sshll.u32 %s173_s29, 7 }
  0x35   : > { %s868_s11 = scalar_lea.hbm %s956_s3, %s487_s0 }
  0x36   : > { %s671_s15 = scalar_lea.hbm %s868_s11, 2048  ;;  %p677_p11 = scmp.lt.u32.totalorder %s868_s11, %s956_s3 }
  0x37   : > { %p672_p7 = scmp.ne.s32.totalorder %s868_s11, %s671_s15  ;;  %p678_p12 = scmp.lt.u32.totalorder %s676_s18, %s671_s15 }
  0x38   : > { %p680_p1 = scmp.lt.u32.totalorder %s671_s15, %s868_s11 }
  0x39   : > { %p674_p9 = pnand %p673_p8, %p672_p7  ;;  %p679_p0 = por %p678_p12, %p677_p11 }
  0x3b   : > { %p675_p10 = pneg %p674_p9  ;;  %p681_p2 = por %p680_p1, %p679_p0 }
  0x3d   : > { %p682_p4 = pnand %p681_p2, %p675_p10 }
  0x3f   : > { %685 = shalt.err (!%p682_p4)
}
  0x40   : > { %s686_s14 = scalar_lea.vmem %s863_s25, 2048  ;;  %s757_s23 = smov [#allocation5]  }
  0x41   : > { %p687_p5 = scmp.ne.s32.totalorder %s863_s25, %s686_s14  ;;  %s691_s24 = sshll.u32 %s757_s23, 4  ;;  %s692_s24 = int_to_ptr.vmem [resolvable:$false] %s691_s24 }
  0x42   : > { %s693_s27 = scalar_lea.vmem %s692_s24, 4096  ;;  %p694_p13 = scmp.lt.s32.totalorder %s863_s25, %s692_s24 }
  0x43   : > { %p689_p7 = pnand %p687_p5, %p673_p8  ;;  %p695_p11 = scmp.lt.s32.totalorder %s693_s27, %s686_s14 }
  0x45   : > { %p690_p9 = pneg %p689_p7  ;;  %p696_p12 = por %p695_p11, %p694_p13 }
  0x47   : > { %p697_p0 = pnand %p696_p12, %p690_p9 }
  0x49   : > { %700 = shalt.err (!%p697_p0)
}
  0x4a   : > { %s758_s28 = smov 128   ;;  %s759_s29 = smov 8  }
  0x4b   : > { %594 = dma.hbm_to_vmem [thread:$0]  (!%p848_p3), %s868_s11, 2048, %s863_s25, %s870_s13, %s758_s28, %s758_s28, %s759_s29  }
  0x4c   : > { %188 = sbr.rel (%p858_p6) target bundleno = 333 (0x14d), region = 28  ;;  %s190_s0 = sand.u32 (!%p858_p6), 1, %s737_s30  }
  0x4d   : > { %s489_s9 = sshll.u32 (!%p858_p6), %s190_s0, 7  ;;  %s191_s10 = scalar_lea.sflag (!%p858_p6), [#allocation6], %s190_s0 }
  0x4e   : > { %s901_s15 = scalar_lea.vmem (!%p858_p6), [#allocation5], %s489_s9  ;;  %p963_p13 = scmp.ne.s32.totalorder (!%p858_p6), %s960_s12, 0 }
  0x53   : > { %728 = dma.done.wait (%p963_p13), %s191_s10, 2048  }
  0x54   : > { %730 = vsyncadd (%p963_p13), %s191_s10, 4294965248  ;;  %s229_s19 = sld [smem:[#allocation3 + %s745_s5]]  ;;  %p230_p3 = scmp.lt.s32.totalorder %s745_s5, 1  ;;  %v253_v0 = vlaneseq  ;;  %v273_v1 = vld [vmem:[%s901_s15] sm:$0xff]  ;;  %v274_v2 = vld [vmem:[%s901_s15 + $0x8] sm:$0xff]  ;;  %v760_v21 = vmov 1.0  }
  0x55   : > { %v275_v3 = vld [vmem:[%s901_s15 + $0x10] sm:$0xff]  ;;  %v553_v5 = vpack.c.bf16 %v274_v2, %v273_v1  ;;  %v276_v6 = vld [vmem:[%s901_s15 + $0x18] sm:$0xff]  ;;  %v277_v8 = vld [vmem:[%s901_s15 + $0x20] sm:$0xff] }
  0x56   : > { %s976_s5 = smov (!%p230_p3, %s745_s5), 1  ;;  %v254_v4 = vshrl.u32 %v253_v0, 7  ;;  %v557_v7 = vpack.c.bf16 %v276_v6, %v275_v3  ;;  %v278_v9 = vld [vmem:[%s901_s15 + $0x28] sm:$0xff]  ;;  %v279_v13 = vld [vmem:[%s901_s15 + $0x30] sm:$0xff]  ;;  %v280_v14 = vld [vmem:[%s901_s15 + $0x38] sm:$0xff] }
  0x57   : > { %554 = vmatprep.subr.bf16.mxu0 %v553_v5  ;;  %v561_v12 = vpack.c.bf16 %v278_v9, %v277_v8  ;;  %v565_v18 = vpack.c.bf16 %v280_v14, %v279_v13  ;;  %v281_v19 = vld [vmem:[%s901_s15 + $0x40] sm:$0xff]  ;;  %v282_v20 = vld [vmem:[%s901_s15 + $0x48] sm:$0xff]  ;;  %v283_v23 = vld [vmem:[%s901_s15 + $0x50] sm:$0xff]  ;;  %s499_s16 = sshll.u32 %s976_s5, 4 }
  0x58   : > { %556 = vmatpush3.bf16.msra.mxu0 %v553_v5  ;;  %v261_v10 = vsub.s32 0, %v254_v4  ;;  %v267_v11 = vsub.s32 1, %v254_v4  ;;  %v569_v22 = vpack.c.bf16 %v282_v20, %v281_v19  ;;  %v284_v24 = vld [vmem:[%s901_s15 + $0x58] sm:$0xff]  ;;  %v285_v26 = vld [vmem:[%s901_s15 + $0x60] sm:$0xff]  ;;  %v286_v27 = vld [vmem:[%s901_s15 + $0x68] sm:$0xff]  ;;  %v255_v32 = vadd.s32 8, %v254_v4  ;;  %s250_s20 = scalar_lea.vmem %s957_s4, %s499_s16 }
  0x59   : > { %558 = vmatprep.subr.bf16.mxu0 %v557_v7  ;;  %v573_v25 = vpack.c.bf16 %v284_v24, %v283_v23  ;;  %v577_v28 = vpack.c.bf16 %v286_v27, %v285_v26  ;;  %v287_v29 = vld [vmem:[%s901_s15 + $0x70] sm:$0xff]  ;;  %v288_v30 = vld [vmem:[%s901_s15 + $0x78] sm:$0xff] }
  0x5a   : > { %p232_p6 = scmp.lt.s32.totalorder %s229_s19, 0  ;;  %v581_v31 = vpack.c.bf16 %v288_v30, %v287_v29 }
  0x5c   : > { %s978_s19 = smov (!%p232_p6, %s229_s19), 0  ;;  %560 = vmatpush3.bf16.msra.mxu0 %v557_v7 }
  0x5d   : > { %s234_s12 = sadd.s32 %s978_s19, %s976_s5  ;;  %562 = vmatprep.subr.bf16.mxu0 %v561_v12 }
  0x5e   : > { %s490_s25 = sshll.u32 %s234_s12, 1 }
  0x5f   : > { %s236_s13 = scalar_lea.vmem %s955_s2, %s490_s25 }
  0x60   : > { %v256_v15 = vld [vmem:[%s236_s13] sm:$0x3]  ;;  %564 = vmatpush3.bf16.msra.mxu0 %v561_v12 }
  0x61   : > { %v262_v16 = vrot.slane %v256_v15, %v261_v10  ;;  %v268_v17 = vrot.slane %v256_v15, %v267_v11  ;;  %566 = vmatprep.subr.bf16.mxu0 %v565_v18 }
  0x63   : > { %vm263_vm0 = vcmp.ge.s32.totalorder %v254_v4, %v262_v16  ;;  %vm269_vm1 = vcmp.lt.s32.totalorder %v254_v4, %v268_v17  ;;  %vm264_vm3 = vcmp.ge.s32.totalorder %v255_v32, %v262_v16  ;;  %vm270_vm4 = vcmp.lt.s32.totalorder %v255_v32, %v268_v17 }
  0x64   : > { %vm271_vm2 = vmand %vm263_vm0, %vm269_vm1  ;;  %568 = vmatpush3.bf16.msra.mxu0 %v565_v18 }
  0x65   : > { %550 = vmatprep.mubr.msk.f32.mxu0 %vm271_vm2, %v760_v21  ;;  %570 = vmatprep.subr.bf16.mxu0 %v569_v22  ;;  %vm272_vm5 = vmand %vm264_vm3, %vm270_vm4 }
  0x68   : > { %572 = vmatpush3.bf16.msra.mxu0 %v569_v22 }
  0x69   : > { %574 = vmatprep.subr.bf16.mxu0 %v573_v25 }
  0x6c   : > { %576 = vmatpush3.bf16.msra.mxu0 %v573_v25 }
  0x6d   : > { %578 = vmatprep.subr.bf16.mxu0 %v577_v28 }
  0x70   : > { %580 = vmatpush3.bf16.msra.mxu0 %v577_v28 }
  0x71   : > { %582 = vmatprep.subr.bf16.mxu0 %v581_v31 }
  0x74   : > { %584 = vmatpush3.bf16.msra.mxu0 %v581_v31 }
  0x77   : > { %551 = vmatmul.mubr.msk.f32.vlgmr.msra.gmra.mrb[0].mxu0 %vm272_vm5, %v760_v21 }
 0x14a   : > { %v552_v33 = vpop.f32.mrb[0].mxu0 }
 0x14b   : > { %369 = vst [vmem:[%s250_s20 + $0x8] sm:$0xff] %v552_v33  ;;  %v359_v34 = vpop.f32.mrb[1].mxu0 }
 0x14c   : > { %368 = vst [vmem:[%s250_s20] sm:$0xff] %v359_v34 }
 0x14d PF: > { %s25_s7 = sadd.s32 1, %s753_s7   ;;  %s964_s0 = smov %s737_s30 }
 0x14e   : > { %p22_p8 = scmp.ge.s32.totalorder %s25_s7, 4   ;;  %s965_s30 = smov %s741_s1 }
 0x14f   : > { %s966_s1 = smov %s853_s21  ;;  %s967_s5 = smov %s749_s6 }
 0x150   : > { %s968_s6 = smov %s970_s8  ;;  %24 = sbr.rel (!%p22_p8) target bundleno = 26 (0x1a), region = 71 }
 0x157   :  { %400 = vsyncpa [#allocation6], 1 }
 0x158   :  { %402 = vsyncpa [#allocation6 + $0x1], 1 }

</bundles_post_ra>
